<compile_context>
chip_gen: v6e
topology: v6e:2x2x1
jax: 0.10.0
libtpu: 0.0.40
codegen_flags: <defaults>
</compile_context>

<pallas_src>
import functools

import jax
import jax.numpy as jnp
from jax import lax
from jax.experimental import pallas as pl
from jax.experimental.pallas import tpu as pltpu

_MIN_PIPELINE_BLOCK_BYTES = 1 * 1024 * 1024


def _round_up(x, m):
    return ((x + m - 1) // m) * m


def _sublane_align(dtype):
    # f32 -> 8, bf16 -> 16, int8/fp8 -> 32 (matches packed sublane tiles).
    return max(8, 32 // jnp.dtype(dtype).itemsize)


def _hw_budget():
    """Generation-aware (input-block byte target, vmem_limit_bytes)."""
    vmem_cap = 0
    try:
        info = pltpu.get_tpu_info()
        vmem_cap = int(getattr(info, "vmem_capacity_bytes", 0) or 0)
    except Exception:
        vmem_cap = 0
    if vmem_cap > 64 * 1024 * 1024:
        # v5e / v6e (128 MiB VMEM): larger blocks amortize ~0.35 us/step.
        return 6 * 1024 * 1024, 80 * 1024 * 1024
    # v7x-class (64 MiB per TC) or unknown backend: conservative, safe anywhere.
    return 2 * 1024 * 1024, 40 * 1024 * 1024


def _block_elems_budget(itemsize, target_block_bytes, vmem_limit_bytes):
    """Max input-block elements, budgeted against actual per-step VMEM usage:
    ~2 input + 2 output buffers (native dtype, double-buffered) plus ~2
    block-sized f32 temporaries inside the kernel."""
    per_elem_bytes = 4 * itemsize + 2 * 4
    by_vmem = (vmem_limit_bytes * 3 // 5) // per_elem_bytes  # ~60% of the limit
    by_target = target_block_bytes // itemsize
    return max(1, min(by_target, by_vmem))


def _pick_row_tile(rows, align, target_rows, row_bytes):
    """Row tile: multiple of `align`, capped by the byte budget, and capped at
    ~ceil(rows/8) whenever each block still moves >= ~1 MiB (keeps >= 8 grid
    steps for pipeline overlap / v7x megacore sharding)."""
    if rows <= align:
        return rows
    t = max(align, (target_rows // align) * align)
    eighth = _round_up(-(-rows // 8), align)
    if eighth * row_bytes >= _MIN_PIPELINE_BLOCK_BYTES:
        t = min(t, eighth)
    if t >= rows:
        return rows  # one full block along the axis (always a legal shape)
    return t


def _in_norm_rows_kernel(x_ref, o_ref, *, eps, inv_s):
    # x_ref: (row_tile, S) — each ROW is one (n, c) instance; S is lane-dense.
    # Centered variance over the VMEM-resident block (avoids E[x^2]-E[x]^2
    # cancellation).  x_ref is re-read per phase so roughly one block-sized
    # f32 temporary is live at a time.
    mean = jnp.sum(x_ref[...].astype(jnp.float32), axis=-1, keepdims=True) * inv_s
    xc = x_ref[...].astype(jnp.float32) - mean
    var = jnp.sum(xc * xc, axis=-1, keepdims=True) * inv_s
    o_ref[...] = (xc * lax.rsqrt(var + eps)).astype(o_ref.dtype)
    # Padded tail rows of a partial edge block are computed on stale VMEM and
    # discarded by the out-of-bounds part of the writeback (intentional).


def _in_norm_twopass_kernel(x_ref, o_ref, sum_ref, ssq_ref, *,
                            eps, inv_s, s_tile, s_total):
    # Grid: (row_blocks, 2 passes, s_chunks).  Pass 0 accumulates per-row
    # (sum, sumsq) over S chunks into VMEM scratch; pass 1 re-reads the same
    # chunks and writes normalized output.  The output block index is pinned
    # to chunk 0 during pass 0, so nothing is written back until pass 1.
    p = pl.program_id(1)
    k = pl.program_id(2)

    @pl.when((p == 0) & (k == 0))
    def _():
        sum_ref[...] = jnp.zeros_like(sum_ref)
        ssq_ref[...] = jnp.zeros_like(ssq_ref)

    @pl.when(p == 0)
    def _():
        x = x_ref[...].astype(jnp.float32)
        if s_total % s_tile != 0:
            # Mask the padded tail of the last S chunk: Pallas pads partial
            # edge blocks with stale VMEM which must not pollute the stats.
            col = lax.broadcasted_iota(jnp.int32, x.shape, 1) + k * s_tile
            x = jnp.where(col < s_total, x, 0.0)
        sum_ref[...] += jnp.sum(x, axis=-1, keepdims=True)
        ssq_ref[...] += jnp.sum(x * x, axis=-1, keepdims=True)

    @pl.when(p == 1)
    def _():
        mean = sum_ref[...] * inv_s
        # E[x^2]-E[x]^2 in f32 (a centered pass would need a 3rd traversal);
        # clamp against small negative cancellation error.
        var = jnp.maximum(ssq_ref[...] * inv_s - mean * mean, 0.0)
        inv = lax.rsqrt(var + eps)
        o_ref[...] = ((x_ref[...].astype(jnp.float32) - mean) * inv).astype(o_ref.dtype)


def instance_norm(x, eps: float = 1e-5, *, _max_block_elems=None):
    """Dim-agnostic instance norm (F.instance_norm defaults). x: [N, C, *spatial]."""
    orig_shape = x.shape
    assert x.ndim >= 3, "instance_norm needs at least one spatial dim"
    n, c = orig_shape[0], orig_shape[1]
    spatial = 1
    for d in orig_shape[2:]:
        spatial *= d
    rows = n * c
    itemsize = jnp.dtype(x.dtype).itemsize
    align = _sublane_align(x.dtype)

    target_block_bytes, vmem_limit = _hw_budget()
    block_elems = _block_elems_budget(itemsize, target_block_bytes, vmem_limit)
    if _max_block_elems is not None:  # test hook: force the two-pass path
        block_elems = min(block_elems, int(_max_block_elems))

    x2d = x.reshape(rows, spatial)
    inv_s = 1.0 / spatial

    # TODO(synk): optionally add input_output_aliases={0: 0} with a donated
    # input to reuse the input HBM buffer (halves peak HBM footprint).

    min_rows = min(rows, align)
    if min_rows * spatial <= block_elems:
        # Single-traversal path: a whole (row_tile, S) slab fits the budget.
        # Used for all S, including S < 128 (block last dim == full array dim);
        # masked partial stores are far cheaper than wrapper-side transposes.
        row_tile = _pick_row_tile(rows, align, max(1, block_elems // spatial),
                                  spatial * itemsize)
        kernel = functools.partial(_in_norm_rows_kernel, eps=eps, inv_s=inv_s)
        out2d = pl.pallas_call(
            kernel,
            out_shape=jax.ShapeDtypeStruct((rows, spatial), x.dtype),
            grid_spec=pltpu.PrefetchScalarGridSpec(
                num_scalar_prefetch=0,
                grid=(pl.cdiv(rows, row_tile),),
                in_specs=[pl.BlockSpec((row_tile, spatial), lambda i: (i, 0))],
                out_specs=pl.BlockSpec((row_tile, spatial), lambda i: (i, 0)),
            ),
            compiler_params=pltpu.CompilerParams(
                dimension_semantics=("parallel",),
                vmem_limit_bytes=vmem_limit,
            ),
        )(x2d)
    else:
        # Large-spatial fallback: fused two-traversal (stats, then normalize)
        # over S chunks so even huge instances never exceed the VMEM budget.
        row_tile = min_rows
        s_tile = max(128, (max(1, block_elems // row_tile) // 128) * 128)
        s_tile = min(s_tile, spatial)
        kernel = functools.partial(_in_norm_twopass_kernel, eps=eps, inv_s=inv_s,
                                   s_tile=s_tile, s_total=spatial)
        out2d = pl.pallas_call(
            kernel,
            out_shape=jax.ShapeDtypeStruct((rows, spatial), x.dtype),
            grid_spec=pltpu.PrefetchScalarGridSpec(
                num_scalar_prefetch=0,
                grid=(pl.cdiv(rows, row_tile), 2, pl.cdiv(spatial, s_tile)),
                in_specs=[pl.BlockSpec((row_tile, s_tile),
                                       lambda i, p, k: (i, k))],
                # Pinned to chunk 0 while p == 0 (no writeback of unwritten
                # blocks); follows k during the normalize pass.
                out_specs=pl.BlockSpec((row_tile, s_tile),
                                       lambda i, p, k: (i, k * p)),
                scratch_shapes=[pltpu.VMEM((row_tile, 1), jnp.float32),
                                pltpu.VMEM((row_tile, 1), jnp.float32)],
            ),
            compiler_params=pltpu.CompilerParams(
                dimension_semantics=("parallel", "arbitrary", "arbitrary"),
                vmem_limit_bytes=vmem_limit,
            ),
        )(x2d)

    out = out2d.reshape(orig_shape)
    assert out.shape == orig_shape
    return out


def _reference_instance_norm(x, eps: float = 1e-5):
    # Pure-JAX reference matching torch.nn.functional.instance_norm defaults.
    axes = tuple(range(2, x.ndim))
    xf = x.astype(jnp.float32)
    mean = jnp.mean(xf, axis=axes, keepdims=True)
    var = jnp.mean((xf - mean) ** 2, axis=axes, keepdims=True)
    return ((xf - mean) / jnp.sqrt(var + eps)).astype(x.dtype)


if __name__ == "__main__":
    key = jax.random.PRNGKey(0)
    k1, k2, k3, k4 = jax.random.split(key, 4)

    # [N, C, H, W] with a lane-dense spatial extent (single-traversal path).
    x1 = jax.random.normal(k1, (2, 4, 16, 16), dtype=jnp.float32) * 3.0 + 1.5
    y1 = jax.block_until_ready(instance_norm(x1))
    assert y1.shape == x1.shape
    assert jnp.allclose(y1, _reference_instance_norm(x1), atol=1e-3, rtol=1e-3), (
        "mismatch vs reference (row path)"
    )

    # Small spatial extent (7x7 = 49 < 128): same row-tiled path, no transposes.
    x2 = jax.random.normal(k2, (2, 4, 7, 7), dtype=jnp.float32) * 2.0 - 0.5
    y2 = jax.block_until_ready(instance_norm(x2))
    assert y2.shape == x2.shape
    assert jnp.allclose(y2, _reference_instance_norm(x2), atol=1e-3, rtol=1e-3), (
        "mismatch vs reference (small-spatial path)"
    )

    # bf16 input (sublane align 16, f32 accumulation inside the kernel).
    x3 = (jax.random.normal(k3, (2, 4, 16, 16), dtype=jnp.float32) * 2.0 + 0.3
          ).astype(jnp.bfloat16)
    y3 = jax.block_until_ready(instance_norm(x3))
    assert y3.shape == x3.shape
    assert jnp.allclose(y3.astype(jnp.float32),
                        _reference_instance_norm(x3).astype(jnp.float32),
                        atol=2e-2, rtol=2e-2), "mismatch vs reference (bf16)"

    # Large-spatial (two-pass) path, forced via the block-budget test hook.
    # spatial = 60*68 = 4080 is not a multiple of the 1024-wide S chunk, so the
    # tail-chunk mask is exercised.
    x4 = jax.random.normal(k4, (2, 4, 60, 68), dtype=jnp.float32) * 1.7 + 0.9
    y4 = jax.block_until_ready(instance_norm(x4, _max_block_elems=8 * 1024))
    assert y4.shape == x4.shape
    assert jnp.allclose(y4, _reference_instance_norm(x4), atol=1e-3, rtol=1e-3), (
        "mismatch vs reference (two-pass path)"
    )

    print("KERNEL_OK")
</pallas_src>

<mosaic_0001>
module attributes {stable_mosaic.version = 11 : i64} {
  func.func @_in_norm_rows_kernel(%arg0: i32, %arg1: memref<8x256xf32, #tpu.memory_space<vmem>>, %arg2: memref<8x256xf32, #tpu.memory_space<vmem>>) attributes {dimension_semantics = [#tpu.dimension_semantics<parallel>], iteration_bounds = array<i64: 1>, scalar_prefetch = 0 : i64, scratch_operands = 0 : i64, tpu.core_type = #tpu.core_type<tc>, window_params = [{transform_indices = @transform_0, window_bounds = array<i64: 8, 256>}, {transform_indices = @transform_1, window_bounds = array<i64: 8, 256>}]} {
    %c0 = arith.constant 0 : index
    %c0_0 = arith.constant 0 : index
    %0 = vector.load %arg1[%c0, %c0_0] : memref<8x256xf32, #tpu.memory_space<vmem>>, vector<8x256xf32>
    %cst = arith.constant dense<0.000000e+00> : vector<8xf32>
    %1 = vector.multi_reduction <add>, %0, %cst [1] : vector<8x256xf32> to vector<8xf32>
    %2 = vector.shape_cast %1 : vector<8xf32> to vector<8x1xf32>
    %cst_1 = arith.constant 3.906250e-03 : f32
    %3 = vector.broadcast %cst_1 : f32 to vector<8x1xf32>
    %4 = arith.mulf %2, %3 : vector<8x1xf32>
    %c0_2 = arith.constant 0 : index
    %c0_3 = arith.constant 0 : index
    %5 = vector.load %arg1[%c0_2, %c0_3] : memref<8x256xf32, #tpu.memory_space<vmem>>, vector<8x256xf32>
    %6 = vector.broadcast %4 : vector<8x1xf32> to vector<8x256xf32>
    %7 = arith.subf %5, %6 : vector<8x256xf32>
    %8 = arith.mulf %7, %7 : vector<8x256xf32>
    %cst_4 = arith.constant dense<0.000000e+00> : vector<8xf32>
    %9 = vector.multi_reduction <add>, %8, %cst_4 [1] : vector<8x256xf32> to vector<8xf32>
    %10 = vector.shape_cast %9 : vector<8xf32> to vector<8x1xf32>
    %cst_5 = arith.constant 3.906250e-03 : f32
    %11 = vector.broadcast %cst_5 : f32 to vector<8x1xf32>
    %12 = arith.mulf %10, %11 : vector<8x1xf32>
    %cst_6 = arith.constant 9.99999974E-6 : f32
    %13 = vector.broadcast %cst_6 : f32 to vector<8x1xf32>
    %14 = arith.addf %12, %13 : vector<8x1xf32>
    %15 = math.rsqrt %14 : vector<8x1xf32>
    %16 = vector.broadcast %15 : vector<8x1xf32> to vector<8x256xf32>
    %17 = arith.mulf %7, %16 : vector<8x256xf32>
    %c0_7 = arith.constant 0 : index
    %c0_8 = arith.constant 0 : index
    %18 = vector.load %arg2[%c0_7, %c0_8] : memref<8x256xf32, #tpu.memory_space<vmem>>, vector<8x256xf32>
    tpu.vector_store %arg2[%c0_7, %c0_8], %17 {strides = array<i32>} : memref<8x256xf32, #tpu.memory_space<vmem>>, vector<8x256xf32>,
    return
  }
  func.func @transform_0(%arg0: i32) -> (i32, i32) {
    %c0_i32 = arith.constant 0 : i32
    %c0_i32_0 = arith.constant 0 : i32
    return %arg0, %c0_i32 : i32, i32
  }
  func.func @transform_1(%arg0: i32) -> (i32, i32) {
    %c0_i32 = arith.constant 0 : i32
    %c0_i32_0 = arith.constant 0 : i32
    return %arg0, %c0_i32 : i32, i32
  }
}

</mosaic_0001>

<bundles_post_ra>
// kernel: tpu_custom_call.1
= control target key start
LH: loop header
LB: loop body
LE: loop exit
PB: predicated region body
PF: predicated region fallthrough
CT: control target
= control target key end

     0   :  { %6 = vsyncpa [#allocation3], 0  ;;  %s122_s0 = inlined_call_operand.hbm [shape: f32[8,256], index: 0, kind: input, shape index: {}]   ;;  %s123_s1 = inlined_call_operand.hbm [shape: f32[8,256], index: 1, kind: output, shape index: {}]  }
   0x1   :  { %7 = vsyncpa [#allocation4], 0  ;;  %s104_s6 = smov [#allocation2]  }
   0x2   :  { %s14_s7 = sshll.u32 %s104_s6, 4  ;;  %s15_s7 = int_to_ptr.vmem [resolvable:$true] %s14_s7 }
   0x3   :  { %s68_s8 = scalar_lea.vmem %s15_s7, 256  ;;  %p73_p1 = scmp.lt.s32.totalorder %s15_s7, %s15_s7 }
   0x4   :  { %p69_p0 = scmp.ne.s32.totalorder %s15_s7, %s68_s8  ;;  %p74_p2 = scmp.lt.s32.totalorder %s68_s8, %s68_s8 }
   0x6   :  { %p75_p3 = por %p74_p2, %p73_p1 }
   0x8   :  { %p76_p4 = pnand %p75_p3, %p69_p0 }
   0xa   :  { %79 = shalt.err (!%p76_p4)
}
   0xb   :  { %17 = dma.hbm_to_vmem [thread:$0]  %s122_s0, 256, %s15_s7, [#allocation3]  }
   0xc   :  { %100 = dma.done.wait [#allocation3], 256  }
   0xd   :  { %101 = vsyncadd [#allocation3], 4294967040  ;;  %v21_v0 = vld [vmem:[#allocation2] sm:$0xff]  ;;  %v22_v1 = vld [vmem:[#allocation2 + $0x8] sm:$0xff]  ;;  %s105_s11 = smov [#allocation5]  }
   0xe   :  { %v23_v2 = vadd.f32 %v22_v1, %v21_v0  ;;  %s47_s0 = sshll.u32 %s105_s11, 4  ;;  %s48_s0 = int_to_ptr.vmem [resolvable:$true] %s47_s0 }
   0xf   :  { %s80_s12 = scalar_lea.vmem %s48_s0, 256  ;;  %p85_p6 = scmp.lt.s32.totalorder %s48_s0, %s48_s0 }
  0x10   :  { %24 = vadd.xlane.f32.xlu0 %v23_v2  ;;  %p81_p5 = scmp.ne.s32.totalorder %s48_s0, %s80_s12  ;;  %p86_p7 = scmp.lt.s32.totalorder %s80_s12, %s80_s12 }
  0x12   :  { %p87_p8 = por %p86_p7, %p85_p6 }
  0x14   :  { %p88_p9 = pnand %p87_p8, %p81_p5 }
  0x99   :  { %v25_v3 = vpop.xlane.xlu0 %24 }
  0x9a   :  { %v26_v4 = vmul.f32 0.00390625, %v25_v3 }
  0x9c   :  { %v27_v5 = vsub.f32 %v21_v0, %v26_v4  ;;  %v28_v6 = vsub.f32 %v22_v1, %v26_v4 }
  0x9e   :  { %v29_v7 = vmul.f32 %v27_v5, %v27_v5  ;;  %v30_v8 = vmul.f32 %v28_v6, %v28_v6 }
  0xa0   :  { %v31_v9 = vadd.f32 %v30_v8, %v29_v7 }
  0xa2   :  { %32 = vadd.xlane.f32.xlu0 %v31_v9 }
 0x12b   :  { %v33_v10 = vpop.xlane.xlu0 %32 }
 0x12c   :  { %v34_v11 = vmul.f32 0.00390625, %v33_v10 }
 0x12e   :  { %v35_v12 = vadd.f32 1e-05, %v34_v11 }
 0x130   :  { %58 = vrsqrt.f32 %v35_v12 }
 0x13d   :  { %v59_v13 = vpop.eup %58 }
 0x13e   :  { %v37_v14 = vmul.f32 %v59_v13, %v27_v5  ;;  %v38_v15 = vmul.f32 %v59_v13, %v28_v6 }
 0x140   :  { %39 = vst [vmem:[#allocation5] sm:$0xff] %v37_v14  ;;  %40 = vst [vmem:[#allocation5 + $0x8] sm:$0xff] %v38_v15 }
 0x141   :  { %91 = shalt.err (!%p88_p9)
}
 0x142   :  { %50 = dma.vmem_to_hbm [thread:$0]  %s48_s0, 256, %s123_s1, [#allocation4]  }
 0x143   :  { %102 = dma.done.wait [#allocation4], 256  }
 0x144   :  { %103 = vsyncadd [#allocation4], 4294967040 }
 0x145   :  { %54 = vsyncpa [#allocation3], 1 }
 0x146   :  { %55 = vsyncpa [#allocation4], 1 }

</bundles_post_ra>
